<compile_context>
chip_gen: v5e
topology: v5e:2x2
jax: 0.10.0
libtpu: 0.0.40
codegen_flags: <defaults>
</compile_context>

<pallas_src>
import functools
import math

import jax
import jax.numpy as jnp
from jax import lax
from jax.experimental import pallas as pl
from jax.experimental.pallas import tpu as pltpu


def _round_up(x, m):
    return ((x + m - 1) // m) * m


def _fold_to_slab(nll):
    """Reduce a (tile, w) f32 tile to an (8, 128) partial slab.

    Pure VPU vreg adds when w is a multiple of 128; otherwise one small XLU
    row reduce into lane 0.
    """
    tile, w = nll.shape
    folded = nll.reshape(tile // 8, 8, w).sum(axis=0)          # (8, w): vreg adds
    if w % 128 == 0:
        slab = folded.reshape(8, w // 128, 128).sum(axis=1)    # (8, 128): vreg adds
    else:
        col = jnp.sum(folded, axis=1, keepdims=True)           # (8, 1): one XLU reduce
        lane = lax.broadcasted_iota(jnp.int32, (8, 128), 1)
        slab = jnp.where(lane == 0, col, 0.0)
    return slab


def _kernel(pred_ref, target_ref, out_ref, *, eps, d, tile, n, approx):
    i = pl.program_id(0)

    pred = pred_ref[...]
    # Slice is a free view when d % 128 == 0; for small/unaligned D it costs
    # one XLU relayout per tile (acceptable at those sizes).
    # TODO(synk): lane-dense repacking for small D (2d <= 64) not implemented.
    loc = pred[:, :d].astype(jnp.float32)
    scale = jnp.maximum(pred[:, d:].astype(jnp.float32), eps)   # clamp_(min=eps)
    target = target_ref[...].astype(jnp.float32)

    inv = pl.reciprocal(scale, approx=approx)                   # EUP divide
    # log(2*scale) -> log(scale); the wrapper adds n*d*ln(2) to the total.
    nll = jnp.log(scale) + jnp.abs(target - loc) * inv          # (tile, d) f32

    rem = n % tile  # static Python int
    if rem == 0:
        out_ref[...] = _fold_to_slab(nll)[None, :, :]
    else:
        last = pl.num_programs(0) - 1

        @pl.when(i != last)
        def _():
            out_ref[...] = _fold_to_slab(nll)[None, :, :]

        @pl.when(i == last)
        def _():
            # Ragged last tile: the DMA clamps and the tail rows hold stale
            # VMEM data; zero them with a SELECT (not a multiply) so NaN/inf
            # garbage cannot leak into the sum.
            rows = lax.broadcasted_iota(jnp.int32, (tile, 1), 0)
            masked = jnp.where(rows < rem, nll, 0.0)
            out_ref[...] = _fold_to_slab(masked)[None, :, :]


def laplace_nll_loss(pred, target, eps=1e-6, reduction="mean", *,
                     vmem_budget_bytes=8 * 1024 * 1024,
                     approx_reciprocal=True):
    """pred: (..., 2*D), target: (..., D).  reduction in {'mean', 'sum'}."""
    if reduction not in ("mean", "sum"):
        # TODO(synk): reduction='none' (full elementwise NLL output) is not
        # implemented as a kernel; only 'mean' and 'sum' are supported here.
        raise ValueError(f"{reduction} is not a supported reduction for this kernel")

    d2 = pred.shape[-1]
    d = d2 // 2
    assert d2 == 2 * d and target.shape[-1] == d
    assert pred.shape[:-1] == target.shape[:-1]

    pred2 = pred.reshape(-1, d2)
    target2 = target.reshape(-1, d)
    n = pred2.shape[0]

    # Row tile: as large as the (double-buffered) VMEM input budget allows,
    # but capped so the grid has >= 4 steps when n permits (dual-TC on v7x).
    SUB = 16  # sublane multiple safe for f32 and packed bf16 tiles
    row_bytes = d2 * pred2.dtype.itemsize + d * target2.dtype.itemsize
    tile_budget = max(SUB, (vmem_budget_bytes // (2 * row_bytes)) // SUB * SUB)
    tile_split = max(SUB, _round_up(pl.cdiv(n, 4), SUB))
    tile = max(SUB, min(tile_budget, 8192, tile_split))
    grid = (pl.cdiv(n, tile),)
    # TODO(synk): a second ("arbitrary") grid axis over D for very wide
    # features is not implemented; D is streamed full-width per tile.

    kernel = functools.partial(_kernel, eps=float(eps), d=d, tile=tile, n=n,
                               approx=approx_reciprocal)

    partials = pl.pallas_call(
        kernel,
        out_shape=jax.ShapeDtypeStruct((grid[0], 8, 128), jnp.float32),
        grid_spec=pltpu.PrefetchScalarGridSpec(
            num_scalar_prefetch=0,
            grid=grid,
            in_specs=[
                pl.BlockSpec((tile, d2), lambda i: (i, 0)),   # pred (loc|scale)
                pl.BlockSpec((tile, d), lambda i: (i, 0)),    # target
            ],
            out_specs=pl.BlockSpec((1, 8, 128), lambda i: (i, 0, 0)),
        ),
        compiler_params=pltpu.CompilerParams(
            dimension_semantics=("parallel",),   # independent partial sums
            vmem_limit_bytes=48 * 1024 * 1024,   # < 64 MiB physical on v7x
        ),
    )(pred2, target2)

    count = n * d
    # Add back the ln(2) factored out of every element (exact identity).
    total = jnp.sum(partials) + jnp.float32(count * math.log(2.0))
    if reduction == "sum":
        return total
    return total / float(count)


if __name__ == "__main__":
    key = jax.random.PRNGKey(0)
    keys = jax.random.split(key, 11)

    def reference(pred, target, eps=1e-6):
        d = pred.shape[-1] // 2
        loc = pred[..., :d].astype(jnp.float32)
        scale = jnp.maximum(pred[..., d:].astype(jnp.float32), eps)
        tgt = target.astype(jnp.float32)
        return jnp.mean(jnp.log(2.0 * scale) + jnp.abs(tgt - loc) / scale)

    # Case 1: f32, unaligned D=32, n=14 rows (ragged tile -> masked last step).
    batch, seq, d = 2, 7, 32
    loc_p = jax.random.normal(keys[0], (batch, seq, d), dtype=jnp.float32)
    scl_p = jnp.abs(jax.random.normal(keys[1], (batch, seq, d), dtype=jnp.float32)) + 0.5
    pred = jnp.concatenate([loc_p, scl_p], axis=-1)
    target = jax.random.normal(keys[2], (batch, seq, d), dtype=jnp.float32)
    loss = jax.block_until_ready(laplace_nll_loss(pred, target))
    ref = reference(pred, target)
    assert jnp.allclose(loss, ref, rtol=2e-3, atol=2e-3), (loss, ref)

    # Case 2: bf16 inputs, lane-dense D=128 (native-dtype streaming, in-kernel
    # f32 upcast, free loc/scale split).
    batch, seq, d = 2, 8, 128
    loc_p = jax.random.normal(keys[3], (batch, seq, d), dtype=jnp.float32)
    scl_p = jnp.abs(jax.random.normal(keys[4], (batch, seq, d), dtype=jnp.float32)) + 0.5
    pred = jnp.concatenate([loc_p, scl_p], axis=-1).astype(jnp.bfloat16)
    target = jax.random.normal(keys[5], (batch, seq, d), dtype=jnp.float32).astype(jnp.bfloat16)
    loss = jax.block_until_ready(laplace_nll_loss(pred, target))
    ref = reference(pred, target)
    assert jnp.allclose(loss, ref, rtol=5e-3, atol=5e-3), (loss, ref)

    # Case 3: clamp path (raw-normal scale has negatives; eps=0.1 keeps the
    # loss well-conditioned so the check stays tight).
    batch, seq, d = 2, 8, 32
    pred = jax.random.normal(keys[6], (batch, seq, 2 * d), dtype=jnp.float32)
    target = jax.random.normal(keys[7], (batch, seq, d), dtype=jnp.float32)
    loss = jax.block_until_ready(laplace_nll_loss(pred, target, eps=0.1))
    ref = reference(pred, target, eps=0.1)
    assert jnp.allclose(loss, ref, rtol=2e-3, atol=2e-3), (loss, ref)

    # Case 4: multi-step grid with ragged last tile (n=132 rows, tile capped
    # to ~cdiv(n,4) -> 3 grid steps, mask on last step only) + 'sum' reduction.
    batch, seq, d = 4, 33, 32
    loc_p = jax.random.normal(keys[8], (batch, seq, d), dtype=jnp.float32)
    scl_p = jnp.abs(jax.random.normal(keys[9], (batch, seq, d), dtype=jnp.float32)) + 0.5
    pred = jnp.concatenate([loc_p, scl_p], axis=-1)
    target = jax.random.normal(keys[10], (batch, seq, d), dtype=jnp.float32)
    loss = jax.block_until_ready(laplace_nll_loss(pred, target, reduction="sum"))
    ref = reference(pred, target) * (batch * seq * d)
    assert jnp.allclose(loss, ref, rtol=2e-3, atol=2e-3), (loss, ref)

    print("KERNEL_OK")
</pallas_src>

<mosaic_0001>
module attributes {stable_mosaic.version = 11 : i64} {
  func.func @_kernel(%arg0: i32, %arg1: memref<16x64xf32, #tpu.memory_space<vmem>>, %arg2: memref<16x32xf32, #tpu.memory_space<vmem>>, %arg3: memref<1x8x128xf32, #tpu.memory_space<vmem>>) attributes {dimension_semantics = [#tpu.dimension_semantics<parallel>], iteration_bounds = array<i64: 1>, scalar_prefetch = 0 : i64, scratch_operands = 0 : i64, tpu.core_type = #tpu.core_type<tc>, window_params = [{transform_indices = @transform_0, window_bounds = array<i64: 16, 64>}, {transform_indices = @transform_1, window_bounds = array<i64: 16, 32>}, {transform_indices = @transform_2, window_bounds = array<i64: 1, 8, 128>}]} {
    %c0 = arith.constant 0 : index
    %c0_0 = arith.constant 0 : index
    %0 = vector.load %arg1[%c0, %c0_0] : memref<16x64xf32, #tpu.memory_space<vmem>>, vector<16x64xf32>
    %1 = vector.extract_strided_slice %0 {offsets = [0, 0], sizes = [16, 32], strides = [1, 1]} : vector<16x64xf32> to vector<16x32xf32>
    %2 = vector.extract_strided_slice %0 {offsets = [0, 32], sizes = [16, 32], strides = [1, 1]} : vector<16x64xf32> to vector<16x32xf32>
    %cst = arith.constant 9.99999997E-7 : f32
    %3 = vector.broadcast %cst : f32 to vector<16x32xf32>
    %4 = arith.maximumf %2, %3 : vector<16x32xf32>
    %c0_1 = arith.constant 0 : index
    %c0_2 = arith.constant 0 : index
    %5 = vector.load %arg2[%c0_1, %c0_2] : memref<16x32xf32, #tpu.memory_space<vmem>>, vector<16x32xf32>
    %6 = tpu.reciprocal %4 {approx = true} : vector<16x32xf32> -> vector<16x32xf32>
    %7 = math.log %4 : vector<16x32xf32>
    %8 = arith.subf %5, %1 : vector<16x32xf32>
    %9 = math.absf %8 : vector<16x32xf32>
    %10 = arith.mulf %9, %6 : vector<16x32xf32>
    %11 = arith.addf %7, %10 : vector<16x32xf32>
    %c0_i32 = arith.constant 0 : i32
    %12 = arith.cmpi ne, %arg0, %c0_i32 : i32
    %13 = arith.extui %12 : i1 to i32
    %c0_i32_3 = arith.constant 0 : i32
    %14 = arith.cmpi ne, %13, %c0_i32_3 : i32
    scf.if %14 {
      %18 = vector.shape_cast %11 : vector<16x32xf32> to vector<2x8x32xf32>
      %cst_6 = arith.constant dense<0.000000e+00> : vector<8x32xf32>
      %19 = vector.multi_reduction <add>, %18, %cst_6 [0] : vector<2x8x32xf32> to vector<8x32xf32>
      %cst_7 = arith.constant dense<0.000000e+00> : vector<8xf32>
      %20 = vector.multi_reduction <add>, %19, %cst_7 [1] : vector<8x32xf32> to vector<8xf32>
      %21 = vector.shape_cast %20 : vector<8xf32> to vector<8x1xf32>
      %22 = tpu.iota {dimensions = array<i32: 1>} : vector<8x128xi32>
      %c0_i32_8 = arith.constant 0 : i32
      %23 = vector.broadcast %c0_i32_8 : i32 to vector<8x128xi32>
      %24 = arith.cmpi eq, %22, %23 : vector<8x128xi32>
      %cst_9 = arith.constant 0.000000e+00 : f32
      %25 = vector.shape_cast %21 : vector<8x1xf32> to vector<8x1xf32>
      %26 = vector.broadcast %25 : vector<8x1xf32> to vector<8x128xf32>
      %27 = vector.broadcast %cst_9 : f32 to vector<8x128xf32>
      %28 = arith.select %24, %26, %27 : vector<8x128xi1>, vector<8x128xf32>
      %29 = vector.shape_cast %28 : vector<8x128xf32> to vector<1x8x128xf32>
      %c0_10 = arith.constant 0 : index
      %c0_11 = arith.constant 0 : index
      %c0_12 = arith.constant 0 : index
      %30 = vector.load %arg3[%c0_10, %c0_11, %c0_12] : memref<1x8x128xf32, #tpu.memory_space<vmem>>, vector<1x8x128xf32>
      tpu.vector_store %arg3[%c0_10, %c0_11, %c0_12], %29 {strides = array<i32>} : memref<1x8x128xf32, #tpu.memory_space<vmem>>, vector<1x8x128xf32>,
    } else {
    }
    %c0_i32_4 = arith.constant 0 : i32
    %15 = arith.cmpi eq, %arg0, %c0_i32_4 : i32
    %16 = arith.extui %15 : i1 to i32
    %c0_i32_5 = arith.constant 0 : i32
    %17 = arith.cmpi ne, %16, %c0_i32_5 : i32
    scf.if %17 {
      %18 = tpu.iota {dimensions = array<i32: 0>} : vector<16x1xi32>
      %c14_i32 = arith.constant 14 : i32
      %19 = vector.broadcast %c14_i32 : i32 to vector<16x1xi32>
      %20 = arith.cmpi slt, %18, %19 : vector<16x1xi32>
      %cst_6 = arith.constant 0.000000e+00 : f32
      %21 = vector.shape_cast %20 : vector<16x1xi1> to vector<16x1xi1>
      %22 = vector.broadcast %21 : vector<16x1xi1> to vector<16x32xi1>
      %23 = vector.broadcast %cst_6 : f32 to vector<16x32xf32>
      %24 = arith.select %22, %11, %23 : vector<16x32xi1>, vector<16x32xf32>
      %25 = vector.shape_cast %24 : vector<16x32xf32> to vector<2x8x32xf32>
      %cst_7 = arith.constant dense<0.000000e+00> : vector<8x32xf32>
      %26 = vector.multi_reduction <add>, %25, %cst_7 [0] : vector<2x8x32xf32> to vector<8x32xf32>
      %cst_8 = arith.constant dense<0.000000e+00> : vector<8xf32>
      %27 = vector.multi_reduction <add>, %26, %cst_8 [1] : vector<8x32xf32> to vector<8xf32>
      %28 = vector.shape_cast %27 : vector<8xf32> to vector<8x1xf32>
      %29 = tpu.iota {dimensions = array<i32: 1>} : vector<8x128xi32>
      %c0_i32_9 = arith.constant 0 : i32
      %30 = vector.broadcast %c0_i32_9 : i32 to vector<8x128xi32>
      %31 = arith.cmpi eq, %29, %30 : vector<8x128xi32>
      %cst_10 = arith.constant 0.000000e+00 : f32
      %32 = vector.shape_cast %28 : vector<8x1xf32> to vector<8x1xf32>
      %33 = vector.broadcast %32 : vector<8x1xf32> to vector<8x128xf32>
      %34 = vector.broadcast %cst_10 : f32 to vector<8x128xf32>
      %35 = arith.select %31, %33, %34 : vector<8x128xi1>, vector<8x128xf32>
      %36 = vector.shape_cast %35 : vector<8x128xf32> to vector<1x8x128xf32>
      %c0_11 = arith.constant 0 : index
      %c0_12 = arith.constant 0 : index
      %c0_13 = arith.constant 0 : index
      %37 = vector.load %arg3[%c0_11, %c0_12, %c0_13] : memref<1x8x128xf32, #tpu.memory_space<vmem>>, vector<1x8x128xf32>
      tpu.vector_store %arg3[%c0_11, %c0_12, %c0_13], %36 {strides = array<i32>} : memref<1x8x128xf32, #tpu.memory_space<vmem>>, vector<1x8x128xf32>,
    } else {
    }
    return
  }
  func.func @transform_0(%arg0: i32) -> (i32, i32) {
    %c0_i32 = arith.constant 0 : i32
    %c0_i32_0 = arith.constant 0 : i32
    return %arg0, %c0_i32 : i32, i32
  }
  func.func @transform_1(%arg0: i32) -> (i32, i32) {
    %c0_i32 = arith.constant 0 : i32
    %c0_i32_0 = arith.constant 0 : i32
    return %arg0, %c0_i32 : i32, i32
  }
  func.func @transform_2(%arg0: i32) -> (i32, i32, i32) {
    %c0_i32 = arith.constant 0 : i32
    %c0_i32_0 = arith.constant 0 : i32
    %c0_i32_1 = arith.constant 0 : i32
    return %arg0, %c0_i32, %c0_i32_0 : i32, i32, i32
  }
}

</mosaic_0001>

<bundles_post_ra>
// kernel: tpu_custom_call.1
= control target key start
LH: loop header
LB: loop body
LE: loop exit
PB: predicated region body
PF: predicated region fallthrough
CT: control target
= control target key end

     0   :  { %7 = vsyncpa [#allocation3], 0  ;;  %s278_s0 = inlined_call_operand.hbm [shape: f32[14,64], index: 0, kind: input, shape index: {}]   ;;  %s279_s1 = inlined_call_operand.hbm [shape: f32[14,32], index: 1, kind: input, shape index: {}]   ;;  %s280_s2 = inlined_call_operand.hbm [shape: f32[1,8,128], index: 2, kind: output, shape index: {}]  }
   0x1   :  { %8 = vsyncpa [#allocation6], 0 }
   0x2   :  { %9 = vsyncpa [#allocation4], 0  ;;  %s14_s11 = sshll.u32 %s278_s0, 4  ;;  %s244_s12 = smov [#allocation2]   ;;  %s15_s11 = int_to_ptr.hbm [resolvable:$true] %s14_s11 }
   0x3   :  { %s16_s13 = sshll.u32 %s244_s12, 4  ;;  %s27_s16 = sshll.u32 %s279_s1, 4  ;;  %s17_s13 = int_to_ptr.vmem [resolvable:$true] %s16_s13  ;;  %s28_s16 = int_to_ptr.hbm [resolvable:$true] %s27_s16 }
   0x4   :  { %s245_s17 = smov 128   ;;  %s246_s18 = smov 8  }
   0x5   :  { %22 = dma.hbm_to_vmem [thread:$0]  %s15_s11, 256, %s17_s13, [#allocation3], %s245_s17, %s245_s17, %s246_s18  }
   0x6   :  { %s247_s19 = smov [#allocation5]  }
   0x7   :  { %s29_s20 = sshll.u32 %s247_s19, 4  ;;  %s30_s20 = int_to_ptr.vmem [resolvable:$true] %s29_s20 }
   0x8   :  { %35 = dma.hbm_to_vmem [thread:$0]  %s28_s16, 256, %s30_s20, [#allocation6], %s245_s17, %s245_s17, %s246_s18  }
   0x9   :  { %238 = dma.done.wait [#allocation3], 256  }
   0xa   :  { %239 = vsyncadd [#allocation3], 4294967040 }
   0xb   :  { %240 = dma.done.wait [#allocation6], 256  }
   0xc   :  { %241 = vsyncadd [#allocation6], 4294967040  ;;  %v45_v0 = vld [vmem:[#allocation2 + $0x8] sm:$0xff]  ;;  %v44_v2 = vld [vmem:[#allocation2] sm:$0xff]  ;;  %s248_s0 = smov 96   ;;  %s249_s1 = smov 32   ;;  %v105_v16 = vlaneseq }
   0xd   :  { %v47_v1 = vmax.f32 %v45_v0, 1e-06  ;;  %v46_v3 = vmax.f32 %v44_v2, 1e-06  ;;  %v49_v6 = vld [vmem:[#allocation5 + $0x8] sm:$0xff]  ;;  %v48_v9 = vld [vmem:[#allocation5] sm:$0xff] }
   0xe   :  { %v57_v7 = vsub.f32 %v49_v6, %v45_v0  ;;  %v56_v12 = vsub.f32 %v48_v9, %v44_v2  ;;  %v106_v18 = vshrl.u32 %v105_v16, 7  ;;  %vm116_vm1 = vcmask 523520   ;;  %s250_s21 = smov [#allocation7]   ;;  %s140_s25 = sshll.u32 %s280_s2, 4  ;;  %s141_s25 = int_to_ptr.hbm [resolvable:$true] %s140_s25 }
   0xf   :  { %158 = vrcp.f32 %v47_v1  ;;  %vm124_vm2 = vcmask 261120   ;;  %v129_v33 = vand.u32 127, %v105_v16  ;;  %s138_s22 = sshll.u32 %s250_s21, 4  ;;  %s139_s22 = int_to_ptr.vmem [resolvable:$true] %s138_s22 }
  0x10   :  { %160 = vrcp.f32 %v46_v3  ;;  %v59_v8 = vand.u32 2147483647, %v57_v7  ;;  %v58_v13 = vand.u32 2147483647, %v56_v12  ;;  %v107_v21 = vadd.s32 8, %v106_v18 }
  0x11   :  { %162 = vlog2.f32 %v47_v1  ;;  %vm130_vm3 = vcmp.eq.s32.totalorder %v129_v33, 0 }
  0x12   :  { %164 = vlog2.f32 %v46_v3  ;;  %vm109_vm0 = vcmp.lt.s32.totalorder %v107_v21, 14 }
  0x15   :  { %v159_v4 = vpop.eup %158 }
  0x16   :  { %64 = vrot.lane.b32.xlu0 %v159_v4, %s248_s0  ;;  %v161_v5 = vpop.eup %160 }
  0x17   :  { %v163_v17 = vpop.eup %162 }
  0x18   :  { %v55_v19 = vmul.f32 0.6931472, %v163_v17  ;;  %v165_v22 = vpop.eup %164 }
  0x19   :  { %v53_v24 = vmul.f32 0.6931472, %v165_v22 }
  0x1e   :  { %62 = vrot.lane.b32.xlu0 %v161_v5, %s248_s0 }
  0x88   :  { %v65_v10 = vpop.permute.xlu0 %64 }
  0x89   :  { %v69_v11 = vmul.f32 %v65_v10, %v59_v8 }
  0x8b   :  { %74 = vrot.lane.b32.xlu1 %v69_v11, %s249_s1 }
  0x90   :  { %v63_v14 = vpop.permute.xlu0 %62 }
  0x91   :  { %v68_v15 = vmul.f32 %v63_v14, %v58_v13 }
  0x93   :  { %72 = vrot.lane.b32.xlu1 %v68_v15, %s249_s1 }
  0xfd   :  { %v75_v20 = vpop.permute.xlu1 %74 }
  0xfe   :  { %v79_v23 = vadd.f32 %v75_v20, %v55_v19 }
 0x100   :  { %v115_v25 = vsel %vm109_vm0, %v79_v23, 0.0 }
 0x101   :  { %v118_v29 = vsel %vm116_vm1, %v115_v25, 0.0 }
 0x105   :  { %v73_v26 = vpop.permute.xlu1 %72 }
 0x106   :  { %v78_v27 = vadd.f32 %v73_v26, %v53_v24 }
 0x108   :  { %v117_v28 = vsel %vm116_vm1, %v78_v27, 0.0 }
 0x109   :  { %v119_v30 = vadd.f32 %v118_v29, %v117_v28 }
 0x10b   :  { %121 = vrot.lane.b32.xlu2 %v119_v30, %s248_s0 }
 0x165   :  { %v122_v31 = vpop.permute.xlu2 %121 }
 0x166   :  { %v125_v32 = vsel %vm124_vm2, %v122_v31, 0.0 }
 0x167   :  { %126 = vadd.xlane.f32.xlu2 %v125_v32 }
 0x1da   :  { %v127_v34 = vpop.xlane.xlu2 %126 }
 0x1db   :  { %v131_v35 = vsel %vm130_vm3, %v127_v34, 0.0 }
 0x1dc   :  { %132 = vst [vmem:[#allocation7] sm:$0xff] %v131_v35 }
 0x1dd   :  { %143 = dma.vmem_to_hbm [thread:$0]  %s139_s22, 128, %s141_s25, [#allocation4]  }
 0x1de   :  { %242 = dma.done.wait [#allocation4], 128  }
 0x1df   :  { %243 = vsyncadd [#allocation4], 4294967168 }
 0x1e0   :  { %148 = vsyncpa [#allocation3], 1 }
 0x1e1   :  { %149 = vsyncpa [#allocation6], 1 }
 0x1e2   :  { %150 = vsyncpa [#allocation4], 1 }

</bundles_post_ra>
